<compile_context>
chip_gen: v6e
topology: v6e:2x2x1
jax: 0.10.0
libtpu: 0.0.40
codegen_flags: <defaults>
</compile_context>

<pallas_src>
import functools

import numpy as np
import jax
import jax.numpy as jnp
from jax import lax
from jax.experimental import pallas as pl
from jax.experimental.pallas import tpu as pltpu

EPS = 1e-5


@functools.lru_cache(maxsize=None)
def _pltpu_roll_is_jnp_convention():
    """True iff pltpu.roll matches jnp.roll (out[i] = x[(i - shift) % n])."""
    def k(x_ref, o_ref):
        o_ref[...] = pltpu.roll(x_ref[...], 1, axis=1)
    x = jnp.arange(8 * 128, dtype=jnp.float32).reshape(8, 128)
    out = pl.pallas_call(k, out_shape=jax.ShapeDtypeStruct((8, 128), jnp.float32))(x)
    return bool(out[0, 0] == 127.0)


def _bi_block(x, p, w_ref, m, masks, shifts, H, W, C):
    """One BI_Block (GroupNorm -> Swish -> BIConv) on one batch element.

    x      : (C, H*W) f32 value          (channels on sublanes)
    p      : (C, 7)  cols = [gn_w, gn_b, move_bias, prelu_a, pr_b0, pr_b1, conv_scale]
    w_ref  : (9, C, C) bf16 sign-only conv weights, w[k, cout, cin], k = ky*3+kx
    m      : (C, C)  within-group averaging matrix for GroupNorm
    masks  : (4, H*W) tap validity masks: rows = [dx=-1, dx=+1, dy=-1, dy=+1]
    shifts : tuple of 9 static ints -- roll amount per tap (wrap masked away)
    """
    HW = H * W
    gn_w, gn_b, tar = p[:, 0:1], p[:, 1:2], p[:, 2:3]
    pa, pb0, pb1, w_scale = p[:, 3:4], p[:, 4:5], p[:, 5:6], p[:, 6:7]

    # GroupNorm (centered two-pass, kept per review numerics caveat) + Swish.
    inv_n = 1.0 / float(HW)
    mu_c = jnp.sum(x, axis=1, keepdims=True) * inv_n                   # (C, 1)
    mu_g = jnp.dot(m, mu_c, preferred_element_type=jnp.float32)        # (C, 1)
    xc = x - mu_g
    var_c = jnp.sum(xc * xc, axis=1, keepdims=True) * inv_n
    var_g = jnp.dot(m, var_c, preferred_element_type=jnp.float32)
    y = xc * (lax.rsqrt(var_g + EPS) * gn_w) + gn_b
    y = y * jax.nn.sigmoid(y)                                          # Swish

    # BIConv: learnable move + binary activation (forward value = sign).
    a = jnp.sign(y + tar)                                              # (C, HW) in {-1,0,+1}

    # 3x3 binary conv = nine (C,C)@(C,HW) bf16 matmuls with f32 accumulation.
    # Each tap is an XLU roll of `a` plus an edge-validity mask; the shift of
    # tap k+1 overlaps the MXU matmul of tap k (no im2col scratch at all).
    z = None
    for k in range(9):
        dy, dx = k // 3 - 1, k % 3 - 1
        sh = shifts[k]
        s = a if sh == 0 else pltpu.roll(a, sh, axis=1)
        mk = None
        if dx == -1:
            mk = masks[0:1]
        elif dx == 1:
            mk = masks[1:2]
        if dy == -1:
            mk = masks[2:3] if mk is None else mk * masks[2:3]
        elif dy == 1:
            mk = masks[3:4] if mk is None else mk * masks[3:4]
        if mk is not None:
            s = s * mk
        zk = jnp.dot(w_ref[k], s.astype(jnp.bfloat16),
                     preferred_element_type=jnp.float32)               # (C, HW) f32
        z = zk if z is None else z + zk
    z = z * w_scale        # per-out-channel HardBinaryConv scale (exact post-scale)

    # RPReLU
    u = z + pb0
    u = jnp.where(u >= 0.0, u, pa * u)
    u = u + pb1

    # residual inside BIConv (to its own input, the GroupNorm+Swish output)
    return u + y


def _bi_resnet_kernel(x_ref, te_ref, mask_ref, m_ref, p1_ref, w1_ref,
                      p2_ref, w2_ref, out_ref, *, H, W, C, shifts):
    x = x_ref[0]                         # (C, HW)
    m = m_ref[...]
    masks = mask_ref[...]                # (4, HW)

    h1 = _bi_block(x, p1_ref[...], w1_ref, m, masks, shifts, H, W, C)
    h1 = h1 + te_ref[0]                  # (C, 1) per-channel time embedding
    h2 = _bi_block(h1, p2_ref[...], w2_ref, m, masks, shifts, H, W, C)

    out_ref[0] = h2 + x                  # outer residual (identity res_conv)


def _vmem_limit_bytes():
    """Generation-gated VMEM cap: v5e/v6e have 128 MiB physical, v7x has 64 MiB."""
    try:
        kind = jax.devices()[0].device_kind.lower()
    except Exception:
        return 32 * 1024 * 1024
    if "v7" in kind or "7x" in kind:
        return 48 * 1024 * 1024
    if "v5" in kind or "v6" in kind:
        return 100 * 1024 * 1024
    return 32 * 1024 * 1024


def bi_resnet_block(x_nchw, time_emb, params):
    """x_nchw: (B, C, H, W) f32, time_emb: (B, E) f32."""
    B, C, H, W = x_nchw.shape
    HW = H * W
    x = x_nchw.reshape(B, C, HW).astype(jnp.float32)

    # timestep_func (Swish -> Linear) is one tiny GEMM: do it once in XLA and
    # feed the kernel a (C, 1) per-channel bias per batch element.
    # TODO(synk): micro -- last-dim-1 VMEM block gives a masked partial load;
    # could be folded into SMEM / a lane-dense slab if it ever shows up.
    ts = time_emb.astype(jnp.float32)
    ts = ts * jax.nn.sigmoid(ts)
    te = (ts @ params["wt"] + params["bt"]).reshape(B, C, 1)

    # Tap validity masks for the 3x3 "SAME" conv: rows = [dx=-1, dx=+1, dy=-1, dy=+1].
    xi = jnp.arange(HW, dtype=jnp.int32) % W
    yi = jnp.arange(HW, dtype=jnp.int32) // W
    masks = jnp.stack([(xi >= 1), (xi <= W - 2), (yi >= 1), (yi <= H - 2)],
                      axis=0).astype(jnp.float32)                      # (4, HW)

    # Static roll amounts per tap (s[c, p] = a[c, p + dy*W + dx], wrap masked).
    jnp_conv = _pltpu_roll_is_jnp_convention()
    shifts = tuple((((-d) % HW) if jnp_conv else (d % HW))
                   for d in ((k // 3 - 1) * W + (k % 3 - 1) for k in range(9)))

    kernel = functools.partial(_bi_resnet_kernel, H=H, W=W, C=C, shifts=shifts)

    # TODO(synk): for stages where even the (C, H*W) activations overflow VMEM,
    # add a spatial grid axis with a 1-row halo plus a GroupNorm stats pre-pass;
    # the threshold is much higher now that the im2col scratch is gone.
    # TODO(synk): single-buffer the batch-invariant inputs below with
    # pipeline_mode=pl.Buffered(1) once that path is verified on the toolchain
    # (their index_maps are constant across the batch grid).
    out = pl.pallas_call(
        kernel,
        out_shape=jax.ShapeDtypeStruct((B, C, HW), jnp.float32),
        grid=(B,),
        in_specs=[
            pl.BlockSpec((1, C, HW), lambda b: (b, 0, 0)),    # x
            pl.BlockSpec((1, C, 1), lambda b: (b, 0, 0)),     # time bias column
            pl.BlockSpec((4, HW), lambda b: (0, 0)),          # conv edge masks
            pl.BlockSpec((C, C), lambda b: (0, 0)),           # group-avg matrix
            pl.BlockSpec((C, 7), lambda b: (0, 0)),           # block1 params
            pl.BlockSpec((9, C, C), lambda b: (0, 0, 0)),     # block1 sign weights (bf16)
            pl.BlockSpec((C, 7), lambda b: (0, 0)),           # block2 params
            pl.BlockSpec((9, C, C), lambda b: (0, 0, 0)),     # block2 sign weights (bf16)
        ],
        out_specs=pl.BlockSpec((1, C, HW), lambda b: (b, 0, 0)),
        compiler_params=pltpu.CompilerParams(
            dimension_semantics=("parallel",),
            vmem_limit_bytes=_vmem_limit_bytes()),
    )(x, te, masks, params["m"], params["p1"], params["w1"],
      params["p2"], params["w2"])

    return out.reshape(B, C, H, W)


# ----------------------------------------------------------------------------
# deterministic parameter construction (synthetic; shapes per module __init__)
# ----------------------------------------------------------------------------
def make_params(key, C, E, groups, dynamic_group=5, t=2):
    keys = jax.random.split(key, 16)

    def per_block(ks):
        gn_w = 1.0 + 0.1 * jax.random.normal(ks[0], (C,))
        gn_b = 0.1 * jax.random.normal(ks[1], (C,))
        tar = (0.1 * jax.random.normal(ks[2], (dynamic_group, C)))[t]
        w_real = 0.5 * jax.random.normal(ks[3], (C, C, 3, 3))          # (Cout, Cin, 3, 3)
        scaling = jnp.mean(jnp.abs(w_real), axis=(1, 2, 3))            # per-outchannel scale
        # sign-only weights packed (k, cout, cin), k = ky*3 + kx; +-1/0 are exact
        # in bf16, the scale is applied post-matmul inside the kernel.
        w9 = jnp.transpose(jnp.sign(w_real), (2, 3, 0, 1)).reshape(9, C, C)
        pa = (0.25 + 0.05 * jax.random.normal(ks[4], (dynamic_group, C)))[t]
        pb0 = (0.1 * jax.random.normal(ks[5], (dynamic_group, C)))[t]
        pb1 = (0.1 * jax.random.normal(ks[6], (dynamic_group, C)))[t]
        p = jnp.stack([gn_w, gn_b, tar, pa, pb0, pb1, scaling], axis=1)  # (C, 7)
        return p.astype(jnp.float32), w9.astype(jnp.bfloat16)

    p1, w1 = per_block(keys[0:7])
    p2, w2 = per_block(keys[7:14])
    wt = (jax.random.normal(keys[14], (E, C)) / jnp.sqrt(E)).astype(jnp.float32)
    bt = (0.1 * jax.random.normal(keys[15], (C,))).astype(jnp.float32)

    cpg = C // groups
    gidx = jnp.arange(C) // cpg
    m = ((gidx[:, None] == gidx[None, :]).astype(jnp.float32) / cpg)

    return dict(p1=p1, w1=w1, p2=p2, w2=w2, wt=wt, bt=bt, m=m.astype(jnp.float32))


# ----------------------------------------------------------------------------
# pure-JAX reference for verification
# ----------------------------------------------------------------------------
def reference_forward(x_nchw, temb, params, groups):
    x = x_nchw.astype(jnp.float32)
    B, C, H, W = x.shape

    def gn_swish(h, gw, gb):
        hg = h.reshape(B, groups, C // groups, H, W)
        mu = jnp.mean(hg, axis=(2, 3, 4), keepdims=True)
        var = jnp.mean((hg - mu) ** 2, axis=(2, 3, 4), keepdims=True)
        hn = ((hg - mu) / jnp.sqrt(var + EPS)).reshape(B, C, H, W)
        hn = hn * gw[None, :, None, None] + gb[None, :, None, None]
        return hn * jax.nn.sigmoid(hn)

    def biconv(h, p, w9):
        gw, gb, tar, pa, pb0, pb1, scale = (p[:, i] for i in range(7))
        y = gn_swish(h, gw, gb)
        a = jnp.sign(y + tar[None, :, None, None])
        w_sign = jnp.transpose(w9.astype(jnp.float32).reshape(3, 3, C, C),
                               (2, 3, 0, 1))                            # (Cout, Cin, 3, 3)
        w_oihw = scale[:, None, None, None] * w_sign
        z = lax.conv_general_dilated(a, w_oihw, (1, 1), "SAME",
                                     dimension_numbers=("NCHW", "OIHW", "NCHW"))
        u = z + pb0[None, :, None, None]
        u = jnp.where(u >= 0, u, pa[None, :, None, None] * u)
        u = u + pb1[None, :, None, None]
        return u + y

    h1 = biconv(x, params["p1"], params["w1"])
    ts = temb.astype(jnp.float32)
    ts = ts * jax.nn.sigmoid(ts)
    te = ts @ params["wt"] + params["bt"]
    h1 = h1 + te[:, :, None, None]
    h2 = biconv(h1, params["p2"], params["w2"])
    return h2 + x


if __name__ == "__main__":
    # Small shapes for correctness only (per review: do NOT tune MXU/tile
    # choices from C=8 -- production stages have C >= 128).
    B, C, H, W, E = 2, 8, 16, 16, 32
    norm_groups = 4          # must divide C
    dynamic_group, t = 5, 2  # dynamic branch selected at forward time

    key = jax.random.PRNGKey(0)
    kx, kt, kp = jax.random.split(key, 3)
    x = jax.random.normal(kx, (B, C, H, W), dtype=jnp.float32)
    time_emb = jax.random.normal(kt, (B, E), dtype=jnp.float32)
    params = make_params(kp, C, E, norm_groups, dynamic_group, t)

    out = bi_resnet_block(x, time_emb, params)
    out = jax.block_until_ready(out)

    ref = reference_forward(x, time_emb, params, norm_groups)
    np.testing.assert_allclose(np.asarray(out), np.asarray(ref), atol=2e-3, rtol=2e-3)

    print("KERNEL_OK")
</pallas_src>

<mosaic_0001>
module attributes {stable_mosaic.version = 11 : i64} {
  func.func @k(%arg0: memref<8x128xf32, #tpu.memory_space<vmem>>, %arg1: memref<8x128xf32, #tpu.memory_space<vmem>>) attributes {dimension_semantics = [], scalar_prefetch = 0 : i64, scratch_operands = 0 : i64, tpu.core_type = #tpu.core_type<tc>} {
    %c0 = arith.constant 0 : index
    %c0_0 = arith.constant 0 : index
    %0 = vector.load %arg0[%c0, %c0_0] : memref<8x128xf32, #tpu.memory_space<vmem>>, vector<8x128xf32>
    %c1_i32 = arith.constant 1 : i32
    %1 = tpu.dynamic_rotate %0 by %c1_i32 dim 1 : vector<8x128xf32>, i32 -> vector<8x128xf32>
    %c0_1 = arith.constant 0 : index
    %c0_2 = arith.constant 0 : index
    %2 = vector.load %arg1[%c0_1, %c0_2] : memref<8x128xf32, #tpu.memory_space<vmem>>, vector<8x128xf32>
    tpu.vector_store %arg1[%c0_1, %c0_2], %1 {strides = array<i32>} : memref<8x128xf32, #tpu.memory_space<vmem>>, vector<8x128xf32>,
    return
  }
}

</mosaic_0001>

<bundles_post_ra>
// kernel: tpu_custom_call.1
= control target key start
LH: loop header
LB: loop body
LE: loop exit
PB: predicated region body
PF: predicated region fallthrough
CT: control target
= control target key end

     0   :  { %6 = vsyncpa [#allocation3], 0  ;;  %s106_s0 = inlined_call_operand.hbm [shape: f32[8,128], index: 0, kind: input, shape index: {}]   ;;  %s107_s1 = inlined_call_operand.hbm [shape: f32[8,128], index: 1, kind: output, shape index: {}]  }
   0x1   :  { %7 = vsyncpa [#allocation4], 0  ;;  %s87_s6 = smov [#allocation2]  }
   0x2   :  { %s14_s7 = sshll.u32 %s87_s6, 4  ;;  %s15_s7 = int_to_ptr.vmem [resolvable:$true] %s14_s7 }
   0x3   :  { %s51_s8 = scalar_lea.vmem %s15_s7, 128  ;;  %p56_p1 = scmp.lt.s32.totalorder %s15_s7, %s15_s7 }
   0x4   :  { %p52_p0 = scmp.ne.s32.totalorder %s15_s7, %s51_s8  ;;  %p57_p2 = scmp.lt.s32.totalorder %s51_s8, %s51_s8 }
   0x6   :  { %p58_p3 = por %p57_p2, %p56_p1 }
   0x8   :  { %p59_p4 = pnand %p58_p3, %p52_p0 }
   0xa   :  { %62 = shalt.err (!%p59_p4)
}
   0xb   :  { %17 = dma.hbm_to_vmem [thread:$0]  %s106_s0, 128, %s15_s7, [#allocation3]  }
   0xc   :  { %83 = dma.done.wait [#allocation3], 128  }
   0xd   :  { %84 = vsyncadd [#allocation3], 4294967168  ;;  %v21_v0 = vld [vmem:[#allocation2] sm:$0xff]  ;;  %s88_s11 = smov 1   ;;  %s89_s12 = smov [#allocation5]  }
   0xe   :  { %22 = vrot.lane.b32.xlu0 %v21_v0, %s88_s11  ;;  %s31_s13 = sshll.u32 %s89_s12, 4  ;;  %s32_s13 = int_to_ptr.vmem [resolvable:$true] %s31_s13 }
   0xf   :  { %s63_s14 = scalar_lea.vmem %s32_s13, 128  ;;  %p68_p6 = scmp.lt.s32.totalorder %s32_s13, %s32_s13 }
  0x10   :  { %p64_p5 = scmp.ne.s32.totalorder %s32_s13, %s63_s14  ;;  %p69_p7 = scmp.lt.s32.totalorder %s63_s14, %s63_s14 }
  0x12   :  { %p70_p8 = por %p69_p7, %p68_p6 }
  0x14   :  { %p71_p9 = pnand %p70_p8, %p64_p5 }
  0x80   :  { %v23_v1 = vpop.permute.xlu0 %22 }
  0x81   :  { %24 = vst [vmem:[#allocation5] sm:$0xff] %v23_v1 }
  0x82   :  { %74 = shalt.err (!%p71_p9)
}
  0x83   :  { %34 = dma.vmem_to_hbm [thread:$0]  %s32_s13, 128, %s107_s1, [#allocation4]  }
  0x84   :  { %85 = dma.done.wait [#allocation4], 128  }
  0x85   :  { %86 = vsyncadd [#allocation4], 4294967168 }
  0x86   :  { %38 = vsyncpa [#allocation3], 1 }
  0x87   :  { %39 = vsyncpa [#allocation4], 1 }

</bundles_post_ra>
